<compile_context>
chip_gen: v5e
topology: v5e:2x2
jax: 0.10.0
libtpu: 0.0.40
codegen_flags: <defaults>
</compile_context>

<pallas_src>
import jax
import jax.numpy as jnp
from jax.experimental import pallas as pl
from jax.experimental.pallas import tpu as pltpu


def _surfmnet_kernel(c12_ref, c21_ref, e1r_ref, e2r_ref, e1c_ref, e2c_ref, out_ref):
    n = pl.program_id(1)

    @pl.when(n == 0)
    def _init():
        out_ref[...] = jnp.zeros_like(out_ref)

    c12 = c12_ref[...]          # (B, K, K) f32
    c21 = c21_ref[...]          # (B, K, K) f32
    e1r = e1r_ref[...]          # (B, 1, K)  eigenvalues of shape 1, row form
    e2r = e2r_ref[...]          # (B, 1, K)
    e1c = e1c_ref[...]          # (B, K, 1)  eigenvalues, column form (pre-shaped in wrapper)
    e2c = e2c_ref[...]          # (B, K, 1)

    K = c12.shape[-1]
    rows = jax.lax.broadcasted_iota(jnp.int32, (K, K), 0)
    cols = jax.lax.broadcasted_iota(jnp.int32, (K, K), 1)
    eye = jnp.where(rows == cols, jnp.float32(1.0), jnp.float32(0.0))

    def fro2(x):
        # squared Frobenius norm summed over the whole tile (batch + matrix dims)
        return jnp.sum(x * x)

    # --- bijectivity: sum_b ||C12 C21 - I||_F^2 + ||C21 C12 - I||_F^2 ---
    p12 = jnp.einsum('bij,bjk->bik', c12, c21, preferred_element_type=jnp.float32)
    p21 = jnp.einsum('bij,bjk->bik', c21, c12, preferred_element_type=jnp.float32)
    bij = fro2(p12 - eye) + fro2(p21 - eye)

    # --- orthogonality: ||C^T C - I||_F^2 == ||C C^T - I||_F^2 for square C ---
    # (same singular values; using C C^T contracts over the last dim of both operands,
    #  avoiding any explicit transpose / XLU work inside the kernel)
    g12 = jnp.einsum('bij,bkj->bik', c12, c12, preferred_element_type=jnp.float32)
    g21 = jnp.einsum('bij,bkj->bik', c21, c21, preferred_element_type=jnp.float32)
    orth = fro2(g12 - eye) + fro2(g21 - eye)

    # --- Laplacian commutativity: ||C12 diag(ev1) - diag(ev2) C12||_F^2 + swap ---
    lap = fro2(c12 * e1r - e2c * c12) + fro2(c21 * e2r - e1c * c21)

    # Accumulate the three scalars into distinct lanes of one lane-dense (1, 8, 128) block.
    lane = jax.lax.broadcasted_iota(jnp.int32, out_ref.shape, 2)
    contrib = (jnp.where(lane == 0, bij, jnp.float32(0.0))
               + jnp.where(lane == 1, orth, jnp.float32(0.0))
               + jnp.where(lane == 2, lap, jnp.float32(0.0)))
    out_ref[...] += contrib


def surfmnet_loss(C12, C21, evals_1, evals_2,
                  w_bij=1.0, w_orth=1.0, w_lap=0.001,
                  num_cores=2, b_tile=None):
    N, K, K2 = C12.shape
    assert K == K2, "functional maps must be square [N, K, K]"

    c12 = C12.astype(jnp.float32)
    c21 = C21.astype(jnp.float32)
    e1 = evals_1.astype(jnp.float32)
    e2 = evals_2.astype(jnp.float32)

    nc = max(1, int(num_cores))
    if b_tile is None:
        # Size the batch tile so the double-buffered C12/C21 blocks stay around ~8 MiB:
        #   2 inputs * 2 buffers * b_tile * K*K * 4 B
        b_tile = max(1, (8 * 1024 * 1024) // (16 * K * K))
        b_tile = min(b_tile, 128)
    b_tile = int(max(1, min(int(b_tile), pl.cdiv(N, nc))))

    t = int(pl.cdiv(N, nc * b_tile))       # grid steps per core
    n_pad = nc * b_tile * t
    pad = n_pad - N
    if pad > 0:
        # Identity maps + zero eigenvalues contribute exactly zero to every loss term.
        eye_pad = jnp.broadcast_to(jnp.eye(K, dtype=jnp.float32), (pad, K, K))
        zeros_ev = jnp.zeros((pad, K), dtype=jnp.float32)
        c12 = jnp.concatenate([c12, eye_pad], axis=0)
        c21 = jnp.concatenate([c21, eye_pad], axis=0)
        e1 = jnp.concatenate([e1, zeros_ev], axis=0)
        e2 = jnp.concatenate([e2, zeros_ev], axis=0)

    # Row and column forms of the eigenvalues (free reshapes; avoids in-kernel transposes).
    e1r = e1.reshape(n_pad, 1, K)
    e2r = e2.reshape(n_pad, 1, K)
    e1c = e1.reshape(n_pad, K, 1)
    e2c = e2.reshape(n_pad, K, 1)

    def tile_map(c, n):
        return (c * t + n, 0, 0)

    out = pl.pallas_call(
        _surfmnet_kernel,
        out_shape=jax.ShapeDtypeStruct((nc, 8, 128), jnp.float32),
        grid_spec=pl.GridSpec(
            grid=(nc, t),
            in_specs=[
                pl.BlockSpec((b_tile, K, K), tile_map),
                pl.BlockSpec((b_tile, K, K), tile_map),
                pl.BlockSpec((b_tile, 1, K), tile_map),
                pl.BlockSpec((b_tile, 1, K), tile_map),
                pl.BlockSpec((b_tile, K, 1), tile_map),
                pl.BlockSpec((b_tile, K, 1), tile_map),
            ],
            out_specs=pl.BlockSpec((1, 8, 128), lambda c, n: (c, 0, 0)),
        ),
        compiler_params=pltpu.CompilerParams(
            dimension_semantics=("parallel", "arbitrary"),
            vmem_limit_bytes=32 * 1024 * 1024),
    )(c12, c21, e1r, e2r, e1c, e2c)

    # Per-core partial sums live in sublane 0, lanes 0..2 of each core's block.
    sums = jnp.sum(out[:, 0, :], axis=0)
    inv_n = jnp.float32(1.0 / N)

    losses = {}
    if w_bij > 0:
        losses["l_bij"] = jnp.float32(w_bij) * sums[0] * inv_n
    if w_orth > 0:
        losses["l_orth"] = jnp.float32(w_orth) * sums[1] * inv_n
    if w_lap > 0:
        losses["l_lap"] = jnp.float32(w_lap) * sums[2] * inv_n
    return losses


def _surfmnet_loss_ref(C12, C21, evals_1, evals_2,
                       w_bij=1.0, w_orth=1.0, w_lap=0.001):
    # Pure-JAX reference mirroring the PyTorch forward.
    N, K, _ = C12.shape
    eye = jnp.eye(K, dtype=jnp.float32)[None]

    def sq_fro_mean(a, b):
        return jnp.mean(jnp.sum(jnp.abs(a - b) ** 2, axis=(-2, -1)))

    bij = sq_fro_mean(jnp.matmul(C12, C21), eye) + sq_fro_mean(jnp.matmul(C21, C12), eye)
    orth = (sq_fro_mean(jnp.matmul(jnp.swapaxes(C12, -1, -2), C12), eye)
            + sq_fro_mean(jnp.matmul(jnp.swapaxes(C21, -1, -2), C21), eye))
    lap = (sq_fro_mean(C12 * evals_1[:, None, :], evals_2[:, :, None] * C12)
           + sq_fro_mean(C21 * evals_2[:, None, :], evals_1[:, :, None] * C21))
    return {"l_bij": w_bij * bij, "l_orth": w_orth * orth, "l_lap": w_lap * lap}


if __name__ == "__main__":
    N, K = 2, 32
    key = jax.random.PRNGKey(0)
    k1, k2, k3, k4 = jax.random.split(key, 4)
    C12 = jax.random.normal(k1, (N, K, K), dtype=jnp.float32)
    C21 = jax.random.normal(k2, (N, K, K), dtype=jnp.float32)
    evals_1 = jax.random.uniform(k3, (N, K), dtype=jnp.float32)
    evals_2 = jax.random.uniform(k4, (N, K), dtype=jnp.float32)

    out = surfmnet_loss(C12, C21, evals_1, evals_2)
    jax.block_until_ready(out)

    ref = _surfmnet_loss_ref(C12, C21, evals_1, evals_2)
    for name in ("l_bij", "l_orth", "l_lap"):
        assert jnp.allclose(out[name], ref[name], rtol=1e-4, atol=1e-4), (
            name, out[name], ref[name])

    print("KERNEL_OK")
</pallas_src>

<mosaic_0001>
module attributes {stable_mosaic.version = 11 : i64} {
  func.func @_surfmnet_kernel(%arg0: i32, %arg1: i32, %arg2: memref<1x32x32xf32, #tpu.memory_space<vmem>>, %arg3: memref<1x32x32xf32, #tpu.memory_space<vmem>>, %arg4: memref<1x1x32xf32, #tpu.memory_space<vmem>>, %arg5: memref<1x1x32xf32, #tpu.memory_space<vmem>>, %arg6: memref<1x32x1xf32, #tpu.memory_space<vmem>>, %arg7: memref<1x32x1xf32, #tpu.memory_space<vmem>>, %arg8: memref<1x8x128xf32, #tpu.memory_space<vmem>>) attributes {dimension_semantics = [#tpu.dimension_semantics<parallel>, #tpu.dimension_semantics<arbitrary>], iteration_bounds = array<i64: 2, 1>, scalar_prefetch = 0 : i64, scratch_operands = 0 : i64, tpu.core_type = #tpu.core_type<tc>, window_params = [{transform_indices = @transform_0, window_bounds = array<i64: 1, 32, 32>}, {transform_indices = @transform_1, window_bounds = array<i64: 1, 32, 32>}, {transform_indices = @transform_2, window_bounds = array<i64: 1, 1, 32>}, {transform_indices = @transform_3, window_bounds = array<i64: 1, 1, 32>}, {transform_indices = @transform_4, window_bounds = array<i64: 1, 32, 1>}, {transform_indices = @transform_5, window_bounds = array<i64: 1, 32, 1>}, {transform_indices = @transform_6, window_bounds = array<i64: 1, 8, 128>}]} {
    %c0_i32 = arith.constant 0 : i32
    %0 = arith.cmpi eq, %arg1, %c0_i32 : i32
    %1 = arith.extui %0 : i1 to i32
    %c0_i32_0 = arith.constant 0 : i32
    %2 = arith.cmpi ne, %1, %c0_i32_0 : i32
    scf.if %2 {
      %cst_39 = arith.constant 0.000000e+00 : f32
      %91 = vector.broadcast %cst_39 : f32 to vector<1x8x128xf32>
      %c0_40 = arith.constant 0 : index
      %c0_41 = arith.constant 0 : index
      %c0_42 = arith.constant 0 : index
      %92 = vector.load %arg8[%c0_40, %c0_41, %c0_42] : memref<1x8x128xf32, #tpu.memory_space<vmem>>, vector<1x8x128xf32>
      tpu.vector_store %arg8[%c0_40, %c0_41, %c0_42], %91 {strides = array<i32>} : memref<1x8x128xf32, #tpu.memory_space<vmem>>, vector<1x8x128xf32>,
    } else {
    }
    %c0 = arith.constant 0 : index
    %c0_1 = arith.constant 0 : index
    %c0_2 = arith.constant 0 : index
    %3 = vector.load %arg2[%c0, %c0_1, %c0_2] : memref<1x32x32xf32, #tpu.memory_space<vmem>>, vector<1x32x32xf32>
    %c0_3 = arith.constant 0 : index
    %c0_4 = arith.constant 0 : index
    %c0_5 = arith.constant 0 : index
    %4 = vector.load %arg3[%c0_3, %c0_4, %c0_5] : memref<1x32x32xf32, #tpu.memory_space<vmem>>, vector<1x32x32xf32>
    %c0_6 = arith.constant 0 : index
    %c0_7 = arith.constant 0 : index
    %c0_8 = arith.constant 0 : index
    %5 = vector.load %arg4[%c0_6, %c0_7, %c0_8] : memref<1x1x32xf32, #tpu.memory_space<vmem>>, vector<1x1x32xf32>
    %c0_9 = arith.constant 0 : index
    %c0_10 = arith.constant 0 : index
    %c0_11 = arith.constant 0 : index
    %6 = vector.load %arg5[%c0_9, %c0_10, %c0_11] : memref<1x1x32xf32, #tpu.memory_space<vmem>>, vector<1x1x32xf32>
    %c0_12 = arith.constant 0 : index
    %c0_13 = arith.constant 0 : index
    %c0_14 = arith.constant 0 : index
    %7 = vector.load %arg6[%c0_12, %c0_13, %c0_14] : memref<1x32x1xf32, #tpu.memory_space<vmem>>, vector<1x32x1xf32>
    %c0_15 = arith.constant 0 : index
    %c0_16 = arith.constant 0 : index
    %c0_17 = arith.constant 0 : index
    %8 = vector.load %arg7[%c0_15, %c0_16, %c0_17] : memref<1x32x1xf32, #tpu.memory_space<vmem>>, vector<1x32x1xf32>
    %9 = tpu.iota {dimensions = array<i32: 0>} : vector<32x32xi32>
    %10 = tpu.iota {dimensions = array<i32: 1>} : vector<32x32xi32>
    %11 = arith.cmpi eq, %9, %10 : vector<32x32xi32>
    %cst = arith.constant 1.000000e+00 : f32
    %cst_18 = arith.constant 0.000000e+00 : f32
    %12 = vector.broadcast %cst : f32 to vector<32x32xf32>
    %13 = vector.broadcast %cst_18 : f32 to vector<32x32xf32>
    %14 = arith.select %11, %12, %13 : vector<32x32xi1>, vector<32x32xf32>
    "tpu.trace_start"() <{level = 10 : i32, message = "bij,bjk->bik"}> : () -> ()
    %cst_19 = arith.constant dense<0.000000e+00> : vector<1x32x32xf32>
    %15 = tpu.matmul %3, %4, %cst_19 {dimension_numbers = #tpu.dot_dimension_numbers<[2], [1], [1], [2], [0, 0, 0, 1, 1, 2], [0], [0]>} : vector<1x32x32xf32>, vector<1x32x32xf32>, vector<1x32x32xf32> -> vector<1x32x32xf32>
    %cst_20 = arith.constant dense<0.000000e+00> : vector<1x32x32xf32>
    %16 = tpu.matmul %4, %3, %cst_20 {dimension_numbers = #tpu.dot_dimension_numbers<[2], [1], [1], [2], [0, 0, 0, 1, 1, 2], [0], [0]>} : vector<1x32x32xf32>, vector<1x32x32xf32>, vector<1x32x32xf32> -> vector<1x32x32xf32>
    "tpu.trace_stop"() : () -> ()
    %17 = vector.shape_cast %14 : vector<32x32xf32> to vector<1x32x32xf32>
    %18 = arith.subf %15, %17 : vector<1x32x32xf32>
    %19 = arith.mulf %18, %18 : vector<1x32x32xf32>
    %20 = vector.shape_cast %19 : vector<1x32x32xf32> to vector<1x1x32x32xf32>
    %cst_21 = arith.constant dense<0.000000e+00> : vector<1xf32>
    %21 = vector.multi_reduction <add>, %20, %cst_21 [1, 2, 3] : vector<1x1x32x32xf32> to vector<1xf32>
    %22 = vector.shape_cast %21 : vector<1xf32> to vector<1x1x1x1xf32>
    %23 = vector.extract %22[0, 0, 0, 0] : f32 from vector<1x1x1x1xf32>
    %24 = vector.shape_cast %14 : vector<32x32xf32> to vector<1x32x32xf32>
    %25 = arith.subf %16, %24 : vector<1x32x32xf32>
    %26 = arith.mulf %25, %25 : vector<1x32x32xf32>
    %27 = vector.shape_cast %26 : vector<1x32x32xf32> to vector<1x1x32x32xf32>
    %cst_22 = arith.constant dense<0.000000e+00> : vector<1xf32>
    %28 = vector.multi_reduction <add>, %27, %cst_22 [1, 2, 3] : vector<1x1x32x32xf32> to vector<1xf32>
    %29 = vector.shape_cast %28 : vector<1xf32> to vector<1x1x1x1xf32>
    %30 = vector.extract %29[0, 0, 0, 0] : f32 from vector<1x1x1x1xf32>
    %31 = arith.addf %23, %30 : f32
    "tpu.trace_start"() <{level = 10 : i32, message = "bij,bkj->bik"}> : () -> ()
    %cst_23 = arith.constant dense<0.000000e+00> : vector<1x32x32xf32>
    %32 = tpu.matmul %3, %3, %cst_23 {dimension_numbers = #tpu.dot_dimension_numbers<[2], [2], [1], [1], [0, 0, 0, 1, 1, 1], [0], [0]>} : vector<1x32x32xf32>, vector<1x32x32xf32>, vector<1x32x32xf32> -> vector<1x32x32xf32>
    %cst_24 = arith.constant dense<0.000000e+00> : vector<1x32x32xf32>
    %33 = tpu.matmul %4, %4, %cst_24 {dimension_numbers = #tpu.dot_dimension_numbers<[2], [2], [1], [1], [0, 0, 0, 1, 1, 1], [0], [0]>} : vector<1x32x32xf32>, vector<1x32x32xf32>, vector<1x32x32xf32> -> vector<1x32x32xf32>
    "tpu.trace_stop"() : () -> ()
    %34 = vector.shape_cast %14 : vector<32x32xf32> to vector<1x32x32xf32>
    %35 = arith.subf %32, %34 : vector<1x32x32xf32>
    %36 = arith.mulf %35, %35 : vector<1x32x32xf32>
    %37 = vector.shape_cast %36 : vector<1x32x32xf32> to vector<1x1x32x32xf32>
    %cst_25 = arith.constant dense<0.000000e+00> : vector<1xf32>
    %38 = vector.multi_reduction <add>, %37, %cst_25 [1, 2, 3] : vector<1x1x32x32xf32> to vector<1xf32>
    %39 = vector.shape_cast %38 : vector<1xf32> to vector<1x1x1x1xf32>
    %40 = vector.extract %39[0, 0, 0, 0] : f32 from vector<1x1x1x1xf32>
    %41 = vector.shape_cast %14 : vector<32x32xf32> to vector<1x32x32xf32>
    %42 = arith.subf %33, %41 : vector<1x32x32xf32>
    %43 = arith.mulf %42, %42 : vector<1x32x32xf32>
    %44 = vector.shape_cast %43 : vector<1x32x32xf32> to vector<1x1x32x32xf32>
    %cst_26 = arith.constant dense<0.000000e+00> : vector<1xf32>
    %45 = vector.multi_reduction <add>, %44, %cst_26 [1, 2, 3] : vector<1x1x32x32xf32> to vector<1xf32>
    %46 = vector.shape_cast %45 : vector<1xf32> to vector<1x1x1x1xf32>
    %47 = vector.extract %46[0, 0, 0, 0] : f32 from vector<1x1x1x1xf32>
    %48 = arith.addf %40, %47 : f32
    %49 = vector.broadcast %5 : vector<1x1x32xf32> to vector<1x32x32xf32>
    %50 = arith.mulf %3, %49 : vector<1x32x32xf32>
    %51 = vector.broadcast %8 : vector<1x32x1xf32> to vector<1x32x32xf32>
    %52 = arith.mulf %51, %3 : vector<1x32x32xf32>
    %53 = arith.subf %50, %52 : vector<1x32x32xf32>
    %54 = arith.mulf %53, %53 : vector<1x32x32xf32>
    %55 = vector.shape_cast %54 : vector<1x32x32xf32> to vector<1x1x32x32xf32>
    %cst_27 = arith.constant dense<0.000000e+00> : vector<1xf32>
    %56 = vector.multi_reduction <add>, %55, %cst_27 [1, 2, 3] : vector<1x1x32x32xf32> to vector<1xf32>
    %57 = vector.shape_cast %56 : vector<1xf32> to vector<1x1x1x1xf32>
    %58 = vector.extract %57[0, 0, 0, 0] : f32 from vector<1x1x1x1xf32>
    %59 = vector.broadcast %6 : vector<1x1x32xf32> to vector<1x32x32xf32>
    %60 = arith.mulf %4, %59 : vector<1x32x32xf32>
    %61 = vector.broadcast %7 : vector<1x32x1xf32> to vector<1x32x32xf32>
    %62 = arith.mulf %61, %4 : vector<1x32x32xf32>
    %63 = arith.subf %60, %62 : vector<1x32x32xf32>
    %64 = arith.mulf %63, %63 : vector<1x32x32xf32>
    %65 = vector.shape_cast %64 : vector<1x32x32xf32> to vector<1x1x32x32xf32>
    %cst_28 = arith.constant dense<0.000000e+00> : vector<1xf32>
    %66 = vector.multi_reduction <add>, %65, %cst_28 [1, 2, 3] : vector<1x1x32x32xf32> to vector<1xf32>
    %67 = vector.shape_cast %66 : vector<1xf32> to vector<1x1x1x1xf32>
    %68 = vector.extract %67[0, 0, 0, 0] : f32 from vector<1x1x1x1xf32>
    %69 = arith.addf %58, %68 : f32
    %70 = tpu.iota {dimensions = array<i32: 2>} : vector<1x8x128xi32>
    %c0_i32_29 = arith.constant 0 : i32
    %71 = vector.broadcast %c0_i32_29 : i32 to vector<1x8x128xi32>
    %72 = arith.cmpi eq, %70, %71 : vector<1x8x128xi32>
    %cst_30 = arith.constant 0.000000e+00 : f32
    %73 = vector.broadcast %31 : f32 to vector<1x8x128xf32>
    %74 = vector.broadcast %cst_30 : f32 to vector<1x8x128xf32>
    %75 = arith.select %72, %73, %74 : vector<1x8x128xi1>, vector<1x8x128xf32>
    %c1_i32 = arith.constant 1 : i32
    %76 = vector.broadcast %c1_i32 : i32 to vector<1x8x128xi32>
    %77 = arith.cmpi eq, %70, %76 : vector<1x8x128xi32>
    %cst_31 = arith.constant 0.000000e+00 : f32
    %78 = vector.broadcast %48 : f32 to vector<1x8x128xf32>
    %79 = vector.broadcast %cst_31 : f32 to vector<1x8x128xf32>
    %80 = arith.select %77, %78, %79 : vector<1x8x128xi1>, vector<1x8x128xf32>
    %81 = arith.addf %75, %80 : vector<1x8x128xf32>
    %c2_i32 = arith.constant 2 : i32
    %82 = vector.broadcast %c2_i32 : i32 to vector<1x8x128xi32>
    %83 = arith.cmpi eq, %70, %82 : vector<1x8x128xi32>
    %cst_32 = arith.constant 0.000000e+00 : f32
    %84 = vector.broadcast %69 : f32 to vector<1x8x128xf32>
    %85 = vector.broadcast %cst_32 : f32 to vector<1x8x128xf32>
    %86 = arith.select %83, %84, %85 : vector<1x8x128xi1>, vector<1x8x128xf32>
    %87 = arith.addf %81, %86 : vector<1x8x128xf32>
    %c0_33 = arith.constant 0 : index
    %c0_34 = arith.constant 0 : index
    %c0_35 = arith.constant 0 : index
    %88 = vector.load %arg8[%c0_33, %c0_34, %c0_35] : memref<1x8x128xf32, #tpu.memory_space<vmem>>, vector<1x8x128xf32>
    %89 = arith.addf %88, %87 : vector<1x8x128xf32>
    %c0_36 = arith.constant 0 : index
    %c0_37 = arith.constant 0 : index
    %c0_38 = arith.constant 0 : index
    %90 = vector.load %arg8[%c0_36, %c0_37, %c0_38] : memref<1x8x128xf32, #tpu.memory_space<vmem>>, vector<1x8x128xf32>
    tpu.vector_store %arg8[%c0_36, %c0_37, %c0_38], %89 {strides = array<i32>} : memref<1x8x128xf32, #tpu.memory_space<vmem>>, vector<1x8x128xf32>,
    return
  }
  func.func @transform_0(%arg0: i32, %arg1: i32) -> (i32, i32, i32) {
    %c1_i32 = arith.constant 1 : i32
    %0 = arith.muli %arg0, %c1_i32 : i32
    %1 = arith.addi %0, %arg1 : i32
    %c0_i32 = arith.constant 0 : i32
    %c0_i32_0 = arith.constant 0 : i32
    %c0_i32_1 = arith.constant 0 : i32
    return %1, %c0_i32, %c0_i32_0 : i32, i32, i32
  }
  func.func @transform_1(%arg0: i32, %arg1: i32) -> (i32, i32, i32) {
    %c1_i32 = arith.constant 1 : i32
    %0 = arith.muli %arg0, %c1_i32 : i32
    %1 = arith.addi %0, %arg1 : i32
    %c0_i32 = arith.constant 0 : i32
    %c0_i32_0 = arith.constant 0 : i32
    %c0_i32_1 = arith.constant 0 : i32
    return %1, %c0_i32, %c0_i32_0 : i32, i32, i32
  }
  func.func @transform_2(%arg0: i32, %arg1: i32) -> (i32, i32, i32) {
    %c1_i32 = arith.constant 1 : i32
    %0 = arith.muli %arg0, %c1_i32 : i32
    %1 = arith.addi %0, %arg1 : i32
    %c0_i32 = arith.constant 0 : i32
    %c0_i32_0 = arith.constant 0 : i32
    %c0_i32_1 = arith.constant 0 : i32
    return %1, %c0_i32, %c0_i32_0 : i32, i32, i32
  }
  func.func @transform_3(%arg0: i32, %arg1: i32) -> (i32, i32, i32) {
    %c1_i32 = arith.constant 1 : i32
    %0 = arith.muli %arg0, %c1_i32 : i32
    %1 = arith.addi %0, %arg1 : i32
    %c0_i32 = arith.constant 0 : i32
    %c0_i32_0 = arith.constant 0 : i32
    %c0_i32_1 = arith.constant 0 : i32
    return %1, %c0_i32, %c0_i32_0 : i32, i32, i32
  }
  func.func @transform_4(%arg0: i32, %arg1: i32) -> (i32, i32, i32) {
    %c1_i32 = arith.constant 1 : i32
    %0 = arith.muli %arg0, %c1_i32 : i32
    %1 = arith.addi %0, %arg1 : i32
    %c0_i32 = arith.constant 0 : i32
    %c0_i32_0 = arith.constant 0 : i32
    %c0_i32_1 = arith.constant 0 : i32
    return %1, %c0_i32, %c0_i32_0 : i32, i32, i32
  }
  func.func @transform_5(%arg0: i32, %arg1: i32) -> (i32, i32, i32) {
    %c1_i32 = arith.constant 1 : i32
    %0 = arith.muli %arg0, %c1_i32 : i32
    %1 = arith.addi %0, %arg1 : i32
    %c0_i32 = arith.constant 0 : i32
    %c0_i32_0 = arith.constant 0 : i32
    %c0_i32_1 = arith.constant 0 : i32
    return %1, %c0_i32, %c0_i32_0 : i32, i32, i32
  }
  func.func @transform_6(%arg0: i32, %arg1: i32) -> (i32, i32, i32) {
    %c0_i32 = arith.constant 0 : i32
    %c0_i32_0 = arith.constant 0 : i32
    %c0_i32_1 = arith.constant 0 : i32
    return %arg0, %c0_i32, %c0_i32_0 : i32, i32, i32
  }
}

</mosaic_0001>

<bundles_post_ra>
// kernel: tpu_custom_call.1
= control target key start
LH: loop header
LB: loop body
LE: loop exit
PB: predicated region body
PF: predicated region fallthrough
CT: control target
= control target key end

     0   :  { %11 = vsyncpa [#allocation3], 0  ;;  %s1553_s0 = inlined_call_operand.vmem [shape: f32[2,32,32], index: 0, kind: input, shape index: {}]   ;;  %s1554_s1 = inlined_call_operand.vmem [shape: f32[2,32,32], index: 1, kind: input, shape index: {}]   ;;  %s1555_s2 = inlined_call_operand.vmem [shape: f32[2,1,32], index: 2, kind: input, shape index: {}]   ;;  %s1556_s3 = inlined_call_operand.hbm [shape: f32[2,1,32], index: 3, kind: input, shape index: {}]   ;;  %s1557_s4 = inlined_call_operand.vmem [shape: f32[2,32,1], index: 4, kind: input, shape index: {}]   ;;  %s1558_s5 = inlined_call_operand.vmem [shape: f32[2,32,1], index: 5, kind: input, shape index: {}]   ;;  %s1559_s6 = inlined_call_operand.hbm [shape: f32[2,8,128], index: 6, kind: output, shape index: {}]  }
   0x1   :  { %13 = vsyncpa [#allocation3 + $0x1], 0 }
   0x2   :  { %14 = vsyncpa [#allocation4], 0 }
   0x3   :  { %16 = vsyncpa [#allocation4 + $0x1], 0  ;;  %s1238_s21 = smov 0   ;;  %s1240_s22 = smov 0  }
   0x4   :  { %s1242_s23 = smov 0   ;;  %s1244_s24 = smov 0  }
   0x5   :  { %s1246_s25 = smov 0   ;;  %s1248_s26 = smov 0  }
   0x6 LB: > { %s960_s27 = sadd.s32 4294967295, %s1199_s26   ;;  %s961_s28 = sadd.s32 4294967294, %s1199_s26   ;;  %s1199_s26 = sphi %s1248_s26, %s22_s26   ;;  %s1195_s25 = sphi %s1246_s25, %s1568_s25   ;;  %s1191_s24 = sphi %s1244_s24, %s1567_s24   ;;  %s1187_s23 = sphi %s1242_s23, %s1566_s23   ;;  %s1183_s22 = sphi %s1240_s22, %s1565_s22   ;;  %s1179_s21 = sphi %s1238_s21, %s1564_s21  }
   0x7   : > { %s34_s29 = sadd.s32 1, %s1195_s25  ;;  %s127_s30 = sadd.s32 1, %s1187_s23 }
   0x8   : > { %p36_p0 = scmp.ge.s32.totalorder %s34_s29, 2  ;;  %p134_p1 = scmp.ne.s32.totalorder %s1187_s23, %s1183_s22 }
   0x9   : > { %p135_p2 = scmp.eq.s32.totalorder %s1199_s26, 0  ;;  %p140_p3 = scmp.ne.s32.totalorder %s1183_s22, %s1179_s21 }
   0xa   : > { %s1570_s29 = smov (%p36_p0, %s34_s29), 0  ;;  %p141_p5 = scmp.eq.s32.totalorder %s960_s27, 0 }
   0xb   : > { %p1279_p4 = por %p135_p2, %p134_p1  ;;  %s124_s8 = ssub.s32 %s1195_s25, %s1570_s29 }
   0xc   : > { %p220_p6 = scmp.eq.s32.totalorder %s960_s27, 1  ;;  %p125_p7 = scmp.eq.s32.totalorder %s124_s8, 0 }
   0xd   : > { %p1285_p8 = por %p141_p5, %p140_p3  ;;  %p226_p10 = scmp.eq.s32.totalorder %s961_s28, 1 }
   0xe   : > { %p1289_p9 = por %p220_p6, %p134_p1  ;;  %p963_p12 = scmp.ge.s32.totalorder %s1199_s26, 2 }
   0xf   : > { %s1294_s11 = scalar_select %p125_p7, %s1187_s23, %s127_s30  }
  0x10   : > { %p1296_p11 = por %p226_p10, %p140_p3  ;;  %p1030_p13 = scmp.lt.s32.totalorder %s1199_s26, 2 }
  0x11   : > { %s274_s13 = sand.u32 1, %s1187_s23   ;;  %s281_s16 = scalar_lea.hbm %s1556_s3, %s1195_s25 }
  0x12   : > { %s277_s17 = scalar_lea.vmem [#allocation2], %s274_s13  ;;  %s283_s19 = sshll.u32 %s281_s16, 4  ;;  %s284_s19 = int_to_ptr.hbm [resolvable:$true] %s283_s19 }
  0x13   : > { %s285_s18 = sshll.u32 %s277_s17, 4  ;;  %p1023_p0 = pnand %p1030_p13, %p1279_p4  ;;  %s286_s18 = int_to_ptr.vmem [resolvable:$true] %s285_s18 }
  0x14   : > { %p964_p1 = scmp.ge.s32.totalorder %s1199_s26, 1  ;;  %p310_p2 = scmp.lt.s32.totalorder %s1199_s26, 3 }
  0x15   : > { %s275_s20 = scalar_lea.sflag [#allocation3], %s274_s13 }
  0x16   : > { %1025 = dma.hbm_to_vmem [thread:$0]  (!%p1023_p0), %s284_s19, 16, %s286_s18, %s275_s20  }
  0x17   : > { %p311_p3 = pnand %p964_p1, %p310_p2 }
  0x18   : > { %s1312_s27 = sand.u32 (!%p311_p3), 1, %s1183_s22  }
  0x19   : > { %314 = sbr.rel (%p311_p3) target bundleno = 412 (0x19c), region = 44  ;;  %s317_s28 = scalar_lea.sflag (!%p311_p3), [#allocation3], %s1312_s27 }
  0x1a   : > { %s319_s30 = scalar_lea.vmem (!%p311_p3), [#allocation2], %s1312_s27 }
  0x1e   : > { %1170 = dma.done.wait (%p1285_p8), %s317_s28, 16  }
  0x1f   : > { %1172 = vsyncadd (%p1285_p8), %s317_s28, 4294967280  ;;  %p377_p4 = scmp.lt.s32.totalorder %s1191_s24, 1  ;;  %v1201_v0 = vmov 0   ;;  %vm448_vm0 = vcmask 261120   ;;  %v433_v17 = vlaneseq  ;;  %v1086_v28 = vld [vmem:[%s319_s30] ss:$0 sm:$0xff] }
  0x20   : > { %1083 = vset.pattern.permute.xlu1 %v1201_v0  ;;  %1082 = vset.pattern.permute.xlu0 %v1201_v0  ;;  %v1202_v30 = vmov 0.0   ;;  %s965_s13 = sshll.u32 %s1312_s27, 3 }
  0x21   : > { %s1322_s7 = scalar_select %p377_p4, %s1191_s24, 1  ;;  %1084 = vset.pattern.permute.xlu2 %v1201_v0  ;;  %v434_v21 = vshrl.u32 %v433_v17, 7  ;;  %v1427_v23 = vand.u32 127, %v433_v17 }
  0x23   : > { %s1002_s8 = sshll.u32 %s1322_s7, 5  ;;  %s393_s16 = scalar_lea.vmem %s1555_s2, %s1322_s7  ;;  %v435_v24 = vadd.s32 8, %v434_v21  ;;  %v436_v25 = vadd.s32 16, %v434_v21  ;;  %vm440_vm1 = vcmp.eq.s32.totalorder %v434_v21, %v1427_v23  ;;  %v437_v45 = vadd.s32 24, %v434_v21 }
  0x24   : > { %s388_s15 = scalar_lea.vmem %s1554_s1, %s1002_s8  ;;  %s381_s9 = scalar_lea.vmem %s1553_s0, %s1002_s8  ;;  %v1434_v31 = vsel %vm440_vm1, 1.0, %v1202_v30  ;;  %v1460_v0 = vld [vmem:[%s393_s16] ss:$0 sm:$0xff]  ;;  %vm801_vm5 = vcmp.eq.s32.totalorder %v1427_v23, 1  ;;  %vm798_vm6 = vcmp.eq.s32.totalorder %v1427_v23, 0  ;;  %vm805_vm7 = vcmp.eq.s32.totalorder %v1427_v23, 2 }
  0x25   : > { %s1334_s20 = scalar_lea.vmem %s1558_s5, %s1002_s8  ;;  %v1336_v1 = vld [vmem:[%s388_s15 + $0x18] sm:$0xff]  ;;  %v1340_v3 = vld [vmem:[%s388_s15 + $0x10] sm:$0xff]  ;;  %s1345_s14 = scalar_lea.vmem %s1557_s4, %s1002_s8  ;;  %v1355_v5 = vld [vmem:[%s388_s15 + $0x8] sm:$0xff]  ;;  %vm441_vm2 = vcmp.eq.s32.totalorder %v435_v24, %v1427_v23  ;;  %vm442_vm3 = vcmp.eq.s32.totalorder %v436_v25, %v1427_v23  ;;  %vm443_vm4 = vcmp.eq.s32.totalorder %v437_v45, %v1427_v23 }
  0x26   : > { %v1338_v2 = vld [vmem:[%s381_s9 + $0x18] sm:$0xff]  ;;  %473 = vmatpush.msra.mxu0 %v1336_v1  ;;  %v1349_v4 = vld [vmem:[%s381_s9 + $0x10] sm:$0xff]  ;;  %990 = vmatpush.xpose.msk.msra.mxu3 %vm448_vm0, %v1336_v1  ;;  %v1357_v6 = vld [vmem:[%s381_s9 + $0x8] sm:$0xff]  ;;  %v1436_v32 = vsel %vm441_vm2, 1.0, %v1202_v30  ;;  %v1442_v38 = vsel %vm442_vm3, 1.0, %v1202_v30  ;;  %v746_v39 = vmul.f32 %v1086_v28, %v1355_v5  ;;  %v747_v56 = vmul.f32 %v1086_v28, %v1340_v3 }
  0x27   : > { %514 = vmatpush.msra.mxu1 %v1338_v2  ;;  %982 = vmatpush.xpose.msk.msra.mxu2 %vm448_vm0, %v1338_v2  ;;  %v429_v7 = vld [vmem:[%s1334_s20] sm:$0xff]  ;;  %v430_v11 = vld [vmem:[%s1334_s20 + $0x8] sm:$0xff]  ;;  %v431_v13 = vld [vmem:[%s1334_s20 + $0x10] sm:$0xff] }
  0x28   : > { %474 = vmatpush.msra.mxu0 %v1340_v3  ;;  %v425_v8 = vld [vmem:[%s1345_s14] sm:$0xff]  ;;  %696 = vperm.xlu0 %1082, %v429_v7   ;;  %v426_v12 = vld [vmem:[%s1345_s14 + $0x8] sm:$0xff]  ;;  %v427_v14 = vld [vmem:[%s1345_s14 + $0x10] sm:$0xff] }
  0x29   : > { %515 = vmatpush.msra.mxu1 %v1349_v4  ;;  %v1363_v9 = vld [vmem:[%s388_s15] sm:$0xff]  ;;  %751 = vperm.xlu1 %1083, %v425_v8   ;;  %v432_v15 = vld [vmem:[%s1334_s20 + $0x18] sm:$0xff]  ;;  %v1462_v8 = vsel %vm443_vm4, 1.0, %v1202_v30 }
  0x2a   : > { %v1365_v10 = vld [vmem:[%s381_s9] sm:$0xff]  ;;  %475 = vmatpush.msra.mxu0 %v1355_v5  ;;  %991 = vmatpush.xpose.msk.msra.mxu3 %vm448_vm0, %v1340_v3  ;;  %v428_v16 = vld [vmem:[%s1345_s14 + $0x18] sm:$0xff]  ;;  %v745_v35 = vmul.f32 %v1086_v28, %v1363_v9  ;;  %s999_s14 = sshll.u32 %s1191_s24, 3  ;;  %s375_s24 = scalar_lea.vmem [#allocation5], %s965_s13 }
  0x2b   : > { %516 = vmatpush.msra.mxu1 %v1357_v6  ;;  %983 = vmatpush.xpose.msk.msra.mxu2 %vm448_vm0, %v1349_v4 }
  0x2c   : > { %476 = vmatpush.msra.mxu0 %v1363_v9  ;;  %706 = vperm.xlu2 %1084, %v431_v13   ;;  %v748_v13 = vmul.f32 %v1086_v28, %v1336_v1 }
  0x2d   : > { %517 = vmatpush.msra.mxu1 %v1365_v10  ;;  %974 = vmatmul.msk.f32.vlgmr.msra.gmra.mxu0 %vm448_vm0, %v1365_v10 }
  0x2e   : > { %978 = vmatmul.msk.f32.vlgmr.msra.gmra.mxu1 %vm448_vm0, %v1363_v9  ;;  %992 = vmatpush.xpose.msk.msra.mxu3 %vm448_vm0, %v1355_v5 }
  0x2f   : > { %984 = vmatpush.xpose.msk.msra.mxu2 %vm448_vm0, %v1357_v6 }
  0x30   : > { %701 = vperm.xlu0 %1082, %v430_v11  }
  0x31   : > { %756 = vperm.xlu1 %1083, %v426_v12  }
  0x32   : > { %993 = vmatpush.xpose.msk.msra.mxu3 %vm448_vm0, %v1363_v9 }
  0x33   : > { %985 = vmatpush.xpose.msk.msra.mxu2 %vm448_vm0, %v1365_v10 }
  0x34   : > { %761 = vperm.xlu2 %1084, %v427_v14  }
  0x35   : > { %975 = vmatmul.msk.f32.gmra.mxu0 %vm448_vm0, %v1357_v6  ;;  %994 = vmatmul.msk.f32.vlgmr.msra.gmra.mxu3 %vm448_vm0, %v1363_v9 }
  0x36   : > { %979 = vmatmul.msk.f32.gmra.mxu1 %vm448_vm0, %v1355_v5  ;;  %986 = vmatmul.msk.f32.vlgmr.msra.gmra.mxu2 %vm448_vm0, %v1365_v10 }
  0x38   : > { %711 = vperm.xlu0 %1082, %v432_v15  }
  0x39   : > { %766 = vperm.xlu1 %1083, %v428_v16  }
  0x3d   : > { %976 = vmatmul.msk.f32.gmra.mxu0 %vm448_vm0, %v1349_v4  ;;  %995 = vmatmul.msk.f32.gmra.mxu3 %vm448_vm0, %v1355_v5 }
  0x3e   : > { %980 = vmatmul.msk.f32.gmra.mxu1 %vm448_vm0, %v1340_v3  ;;  %987 = vmatmul.msk.f32.gmra.mxu2 %vm448_vm0, %v1357_v6 }
  0x45   : > { %977 = vmatmul.msk.f32.gmra.mxu0 %vm448_vm0, %v1338_v2  ;;  %996 = vmatmul.msk.f32.gmra.mxu3 %vm448_vm0, %v1340_v3 }
  0x46   : > { %981 = vmatmul.msk.f32.gmra.mxu1 %vm448_vm0, %v1336_v1  ;;  %988 = vmatmul.msk.f32.gmra.mxu2 %vm448_vm0, %v1349_v4 }
  0x4d   : > { %997 = vmatmul.msk.f32.gmra.mxu3 %vm448_vm0, %v1336_v1 }
  0x4e   : > { %989 = vmatmul.msk.f32.gmra.mxu2 %vm448_vm0, %v1338_v2 }
  0x86   : > { %v1425_v22 = vpop.permute.xlu2 %706 }
  0x8e   : > { %v762_v41 = vpop.permute.xlu2 %761 }
  0x8f   : > { %v771_v57 = vmul.f32 %v762_v41, %v1340_v3 }
  0x91   : > { %v775_v12 = vsub.f32 %v747_v56, %v771_v57 }
  0x9a   : > { %v697_v36 = vpop.permute.xlu0 %696 }
  0x9b   : > { %v752_v18 = vpop.permute.xlu1 %751 }
  0x9c   : > { %v769_v37 = vmul.f32 %v752_v18, %v1363_v9 }
  0x9e   : > { %v773_v53 = vsub.f32 %v745_v35, %v769_v37  ;;  %v714_v35 = vmul.f32 %v697_v36, %v1365_v10  ;;  %v691_v37 = vmul.f32 %v1460_v0, %v1357_v6 }
  0xa2   : > { %v702_v21 = vpop.permute.xlu0 %701 }
  0xa3   : > { %v757_v29 = vpop.permute.xlu1 %756  ;;  %v715_v41 = vmul.f32 %v702_v21, %v1357_v6 }
  0xa4   : > { %v770_v40 = vmul.f32 %v757_v29, %v1355_v5  ;;  %v777_v5 = vmul.f32 %v773_v53, %v773_v53 }
  0xa5   : > { %v719_v57 = vsub.f32 %v691_v37, %v715_v41 }
  0xa6   : > { %v774_v54 = vsub.f32 %v746_v39, %v770_v40 }
  0xa8   : > { %v778_v7 = vmul.f32 %v774_v54, %v774_v54 }
  0xaa   : > { %v478_v19 = vpop.f32.mrf.mxu0  ;;  %v782_v28 = vsel %vm448_vm0, %v778_v7, 0.0 }
  0xab   : > { %v519_v20 = vpop.f32.mrf.mxu1  ;;  %v531_v46 = vsub.f32 %v478_v19, %v1434_v31  ;;  %v767_v59 = vpop.permute.xlu1 %766 }
  0xac   : > { %v555_v33 = vsub.f32 %v519_v20, %v1434_v31  ;;  %v772_v14 = vmul.f32 %v767_v59, %v1336_v1  ;;  %v781_v1 = vsel %vm448_vm0, %v777_v5, 0.0 }
  0xad   : > { %v535_v58 = vmul.f32 %v531_v46, %v531_v46  ;;  %v783_v46 = vadd.f32 %v782_v28, %v781_v1 }
  0xae   : > { %v559_v49 = vmul.f32 %v555_v33, %v555_v33  ;;  %v779_v33 = vmul.f32 %v775_v12, %v775_v12 }
  0xaf   : > { %v539_v15 = vsel %vm448_vm0, %v535_v58, 0.0 }
  0xb0   : > { %v563_v60 = vsel %vm448_vm0, %v559_v49, 0.0  ;;  %v784_v6 = vsel %vm448_vm0, %v779_v33, 0.0 }
  0xb1   : > { %v785_v58 = vadd.f32 %v784_v6, %v783_v46 }
  0xb2   : > { %v481_v26 = vpop.f32.mrf.mxu0 }
  0xb3   : > { %v522_v27 = vpop.f32.mrf.mxu1  ;;  %v532_v42 = vsub.f32 %v481_v26, %v1436_v32 }
  0xb4   : > { %v556_v34 = vsub.f32 %v522_v27, %v1436_v32  ;;  %v690_v27 = vmul.f32 %v1460_v0, %v1365_v10 }
  0xb5   : > { %v536_v55 = vmul.f32 %v532_v42, %v532_v42 }
  0xb6   : > { %v560_v50 = vmul.f32 %v556_v34, %v556_v34  ;;  %v776_v34 = vsub.f32 %v748_v13, %v772_v14  ;;  %v718_v56 = vsub.f32 %v690_v27, %v714_v35 }
  0xb7   : > { %v540_v3 = vsel %vm448_vm0, %v536_v55, 0.0 }
  0xb8   : > { %v626_v44 = vpop.f32.mrf.mxu3  ;;  %v564_v61 = vsel %vm448_vm0, %v560_v50, 0.0  ;;  %v541_v26 = vadd.f32 %v540_v3, %v539_v15  ;;  %v722_v5 = vmul.f32 %v718_v56, %v718_v56  ;;  %v723_v3 = vmul.f32 %v719_v57, %v719_v57 }
  0xb9   : > { %v597_v43 = vpop.f32.mrf.mxu2  ;;  %v565_v16 = vadd.f32 %v564_v61, %v563_v60  ;;  %v662_v36 = vsub.f32 %v626_v44, %v1434_v31  ;;  %v712_v61 = vpop.permute.xlu0 %711 }
  0xba   : > { %v484_v47 = vpop.f32.mrf.mxu0  ;;  %v638_v10 = vsub.f32 %v597_v43, %v1434_v31  ;;  %v716_v43 = vmul.f32 %v1425_v22, %v1349_v4  ;;  %v717_v22 = vmul.f32 %v712_v61, %v1338_v2 }
  0xbb   : > { %v525_v48 = vpop.f32.mrf.mxu1  ;;  %v533_v51 = vsub.f32 %v484_v47, %v1442_v38  ;;  %v666_v60 = vmul.f32 %v662_v36, %v662_v36 }
  0xbc   : > { %v557_v52 = vsub.f32 %v525_v48, %v1442_v38  ;;  %v642_v59 = vmul.f32 %v638_v10, %v638_v10 }
  0xbd   : > { %v537_v62 = vmul.f32 %v533_v51, %v533_v51  ;;  %v780_v51 = vmul.f32 %v776_v34, %v776_v34  ;;  %v670_v14 = vsel %vm448_vm0, %v666_v60, 0.0 }
  0xbe   : > { %v561_v63 = vmul.f32 %v557_v52, %v557_v52  ;;  %v646_v13 = vsel %vm448_vm0, %v642_v59, 0.0 }
  0xbf   : > { %v542_v19 = vsel %vm448_vm0, %v537_v62, 0.0  ;;  %v786_v62 = vsel %vm448_vm0, %v780_v51, 0.0 }
  0xc0   : > { %v629_v11 = vpop.f32.mrf.mxu3  ;;  %v566_v20 = vsel %vm448_vm0, %v561_v63, 0.0  ;;  %v543_v40 = vadd.f32 %v542_v19, %v541_v26  ;;  %v787_v12 = vadd.f32 %v786_v62, %v785_v58 }
  0xc1   : > { %v600_v9 = vpop.f32.mrf.mxu2  ;;  %v567_v39 = vadd.f32 %v566_v20, %v565_v16  ;;  %v663_v48 = vsub.f32 %v629_v11, %v1436_v32  ;;  %v726_v20 = vsel %vm448_vm0, %v722_v5, 0.0 }
  0xc2   : > { %v487_v17 = vpop.f32.mrf.mxu0  ;;  %v639_v47 = vsub.f32 %v600_v9, %v1436_v32  ;;  %v692_v32 = vmul.f32 %v1460_v0, %v1349_v4  ;;  %v693_v9 = vmul.f32 %v1460_v0, %v1338_v2 }
  0xc3   : > { %v528_v18 = vpop.f32.mrf.mxu1  ;;  %v534_v24 = vsub.f32 %v487_v17, %v1462_v8  ;;  %v667_v44 = vmul.f32 %v663_v48, %v663_v48 }
  0xc4   : > { %v558_v25 = vsub.f32 %v528_v18, %v1462_v8  ;;  %v643_v31 = vmul.f32 %v639_v47, %v639_v47  ;;  %v720_v7 = vsub.f32 %v692_v32, %v716_v43  ;;  %v721_v26 = vsub.f32 %v693_v9, %v717_v22 }
  0xc5   : > { %v538_v29 = vmul.f32 %v534_v24, %v534_v24  ;;  %v671_v4 = vsel %vm448_vm0, %v667_v44, 0.0 }
  0xc6   : > { %v562_v30 = vmul.f32 %v558_v25, %v558_v25  ;;  %v647_v11 = vsel %vm448_vm0, %v643_v31, 0.0  ;;  %v724_v21 = vmul.f32 %v720_v7, %v720_v7  ;;  %v672_v24 = vadd.f32 %v671_v4, %v670_v14 }
  0xc7   : > { %v544_v45 = vsel %vm448_vm0, %v538_v29, 0.0  ;;  %v648_v2 = vadd.f32 %v647_v11, %v646_v13  ;;  %v727_v25 = vsel %vm448_vm0, %v723_v3, 0.0  ;;  %v725_v37 = vmul.f32 %v721_v26, %v721_v26 }
  0xc8   : > { %v568_v42 = vsel %vm448_vm0, %v562_v30, 0.0  ;;  %v545_v50 = vadd.f32 %v544_v45, %v543_v40  ;;  %v632_v53 = vpop.f32.mrf.mxu3 }
  0xc9   : > { %v569_v49 = vadd.f32 %v568_v42, %v567_v39  ;;  %v603_v52 = vpop.f32.mrf.mxu2  ;;  %v664_v55 = vsub.f32 %v632_v53, %v1442_v38  ;;  %v729_v39 = vsel %vm448_vm0, %v724_v21, 0.0  ;;  %v731_v41 = vsel %vm448_vm0, %v725_v37, 0.0 }
  0xca   : > { %v640_v54 = vsub.f32 %v603_v52, %v1442_v38  ;;  %546 = vadd.xlane.f32.xlu2 %v545_v50 }
  0xcb   : > { %570 = vadd.xlane.f32.xlu0 %v569_v49  ;;  %v668_v38 = vmul.f32 %v664_v55, %v664_v55 }
  0xcc   : > { %v644_v63 = vmul.f32 %v640_v54, %v640_v54 }
  0xcd   : > { %v673_v18 = vsel %vm448_vm0, %v668_v38, 0.0 }
  0xce   : > { %v649_v17 = vsel %vm448_vm0, %v644_v63, 0.0  ;;  %v674_v29 = vadd.f32 %v673_v18, %v672_v24 }
  0xcf   : > { %v650_v28 = vadd.f32 %v649_v17, %v648_v2 }
  0xd0   : > { %v635_v16 = vpop.f32.mrf.mxu3 }
  0xd1   : > { %v606_v15 = vpop.f32.mrf.mxu2  ;;  %v665_v0 = vsub.f32 %v635_v16, %v1462_v8 }
  0xd2   : > { %v641_v19 = vsub.f32 %v606_v15, %v1462_v8  ;;  %v728_v8 = vadd.f32 %v727_v25, %v726_v20 }
  0xd3   : > { %788 = vadd.xlane.f32.xlu0 %v787_v12  ;;  %v669_v1 = vmul.f32 %v665_v0, %v665_v0 }
  0xd4   : > { %v645_v27 = vmul.f32 %v641_v19, %v641_v19  ;;  %v730_v40 = vadd.f32 %v729_v39, %v728_v8 }
  0xd5   : > { %v675_v33 = vsel %vm448_vm0, %v669_v1, 0.0 }
  0xd6   : > { %v651_v30 = vsel %vm448_vm0, %v645_v27, 0.0  ;;  %v676_v35 = vadd.f32 %v675_v33, %v674_v29  ;;  %v732_v42 = vadd.f32 %v731_v41, %v730_v40 }
  0xd7   : > { %v652_v34 = vadd.f32 %v651_v30, %v650_v28 }
  0xd8   : > { %677 = vadd.xlane.f32.xlu2 %v676_v35 }
  0xd9   : > { %653 = vadd.xlane.f32.xlu1 %v652_v34 }
  0xe0   : > { %733 = vadd.xlane.f32.xlu2 %v732_v42 }
 0x13d   : > { %v547_v46 = vpop.xlane.xlu2 %546 }
 0x13e   : > { %v571_v45 = vpop.xlane.xlu0 %570  ;;  %v548_v48 = vrot.slane %v547_v46, 4 }
 0x13f   : > { %v572_v47 = vrot.slane %v571_v45, 4 }
 0x140   : > { %v549_v50 = vadd.f32 %v548_v48, %v547_v46 }
 0x141   : > { %v573_v49 = vadd.f32 %v572_v47, %v571_v45 }
 0x142   : > { %v550_v36 = vrot.slane %v549_v50, 2 }
 0x143   : > { %v574_v10 = vrot.slane %v573_v49, 2 }
 0x144   : > { %v551_v51 = vadd.f32 %v550_v36, %v549_v50 }
 0x145   : > { %v575_v52 = vadd.f32 %v574_v10, %v573_v49 }
 0x146   : > { %v552_v53 = vrot.slane %v551_v51, 1  ;;  %v789_v56 = vpop.xlane.xlu0 %788 }
 0x147   : > { %v576_v6 = vrot.slane %v575_v52, 1  ;;  %v790_v32 = vrot.slane %v789_v56, 4 }
 0x148   : > { %v553_v54 = vadd.f32 %v552_v53, %v551_v51 }
 0x149   : > { %v577_v55 = vadd.f32 %v576_v6, %v575_v52  ;;  %v791_v60 = vadd.f32 %v790_v32, %v789_v56 }
 0x14a   : > { %1006 = vpush %v553_v54 }
 0x14b   : > { %1008 = vpush %v577_v55  ;;  %v678_v57 = vpop.xlane.xlu2 %677  ;;  %v792_v5 = vrot.slane %v791_v60, 2 }
 0x14c   : > { %v654_v43 = vpop.xlane.xlu1 %653  ;;  %v679_v44 = vrot.slane %v678_v57, 4 }
 0x14d   : > { %v655_v31 = vrot.slane %v654_v43, 4  ;;  %v793_v13 = vadd.f32 %v792_v5, %v791_v60 }
 0x14e   : > { %v680_v59 = vadd.f32 %v679_v44, %v678_v57 }
 0x14f   : > { %v656_v58 = vadd.f32 %v655_v31, %v654_v43  ;;  %v794_v16 = vrot.slane %v793_v13, 1 }
 0x150   : > { %v681_v62 = vrot.slane %v680_v59, 2 }
 0x151   : > { %v657_v61 = vrot.slane %v656_v58, 2  ;;  %v795_v19 = vadd.f32 %v794_v16, %v793_v13 }
 0x152   : > { %v682_v38 = vadd.f32 %v681_v62, %v680_v59 }
 0x153   : > { %v658_v63 = vadd.f32 %v657_v61, %v656_v58  ;;  %v734_v7 = vpop.xlane.xlu2 %733 }
 0x154   : > { %v735_v3 = vrot.slane %v734_v7, 4  ;;  %v683_v11 = vrot.slane %v682_v38, 1 }
 0x155   : > { %v659_v9 = vrot.slane %v658_v63, 1 }
 0x156   : > { %v736_v4 = vadd.f32 %v735_v3, %v734_v7  ;;  %v684_v12 = vadd.f32 %v683_v11, %v682_v38 }
 0x157   : > { %v660_v22 = vadd.f32 %v659_v9, %v658_v63 }
 0x158   : > { %v737_v14 = vrot.slane %v736_v4, 2 }
 0x159   : > { %1010 = vpush %v660_v22 }
 0x15a   : > { %1012 = vpush %v684_v12  ;;  %v738_v15 = vadd.f32 %v737_v14, %v736_v4 }
 0x15c   : > { %v739_v17 = vrot.slane %v738_v15, 1 }
 0x15e   : > { %v740_v18 = vadd.f32 %v739_v17, %v738_v15 }
 0x160   : > { %1014 = vpush %v740_v18 }
 0x161   : > { %1016 = vpush %v795_v19 }
 0x17b   : > { %s1007_s7 = spop %1006 }
 0x17c   : > { %s1009_s9 = spop %1008 }
 0x17d   : > { %s579_s28 = sadd.f32 %s1009_s9, %s1007_s7  ;;  %s825_s7 = sshll.u32 %s375_s24, 4  ;;  %s826_s7 = int_to_ptr.vmem [resolvable:$true] %s825_s7 }
 0x17f   : > { %v799_v20 = vstv %s579_s28 }
 0x180   : > { %v800_v2 = vsel %vm798_vm6, %v799_v20, 0.0 }
 0x18a   : > { %s1011_s18 = spop %1010 }
 0x18b   : > { %s1013_s19 = spop %1012 }
 0x18c   : > { %s686_s20 = sadd.f32 %s1013_s19, %s1011_s18  ;;  %s823_s18 = scalar_lea.hbm %s1559_s6, %s999_s14 }
 0x18d   : > { %s827_s9 = sshll.u32 %s823_s18, 4  ;;  %s813_s19 = scalar_lea.sflag [#allocation4], %s1312_s27  ;;  %s828_s9 = int_to_ptr.hbm [resolvable:$true] %s827_s9 }
 0x18e   : > { %v802_v0 = vstv %s686_s20  ;;  %s1131_s20 = sshra.s32 %s828_s9, 4  ;;  %s1132_s20 = int_to_ptr.hbm [resolvable:$true] %s1131_s20 }
 0x18f   : > { %v803_v21 = vsel %vm801_vm5, %v802_v0, 0.0  ;;  %s1133_s28 = scalar_lea.hbm %s1132_s20, 8  ;;  %p1138_p8 = scmp.lt.s32.totalorder %s1132_s20, %s1559_s6 }
 0x190   : > { %v804_v24 = vadd.f32 %v803_v21, %v800_v2  ;;  %p1134_p5 = scmp.ne.s32.totalorder %s1132_s20, %s1133_s28 }
 0x191   : > { %s1015_s8 = spop %1014 }
 0x192   : > { %s1017_s15 = spop %1016  ;;  %p1135_p6 = pnand %p1134_p5, %p1289_p9 }
 0x193   : > { %s797_s16 = sadd.f32 %s1017_s15, %s1015_s8  ;;  %s1137_s15 = scalar_lea.hbm %s1559_s6, 16 }
 0x194   : > { %p1136_p7 = pneg %p1135_p6  ;;  %p1139_p10 = scmp.lt.s32.totalorder %s1137_s15, %s1133_s28 }
 0x195   : > { %v806_v25 = vstv %s797_s16 }
 0x196   : > { %v807_v26 = vsel %vm805_vm7, %v806_v25, 0.0  ;;  %p1140_p13 = por %p1139_p10, %p1138_p8 }
 0x197   : > { %v808_v27 = vadd.f32 %v807_v26, %v804_v24 }
 0x198   : > { %p1141_p0 = pnand %p1140_p13, %p1136_p7 }
 0x199   : > { %811 = vst [vmem:[%s375_s24] sm:$0xff] %v808_v27 }
 0x19a   : > { %1144 = shalt.err (!%p1141_p0)
}
 0x19b   : > { %1020 = dma.vmem_to_hbm [thread:$0]  (%p1289_p9), %s826_s7, 128, %s828_s9, %s813_s19  }
 0x19c PF: > { %s839_s27 = sand.u32 1, %s1179_s21   ;;  %p1027_p1 = pnand %p963_p12, %p1296_p11 }
 0x19d   : > { %s840_s30 = scalar_lea.sflag [#allocation4], %s839_s27 }
 0x19e   : > { %p1028_p2 = pneg %p1027_p1 }
 0x1a0   : > { %1174 = dma.done.wait (%p1028_p2), %s840_s30, 128  }
 0x1a1   : > { %1176 = vsyncadd (%p1028_p2), %s840_s30, 4294967168  ;;  %s22_s26 = sadd.s32 1, %s1199_s26   ;;  %s1564_s21 = smov %s1183_s22 }
 0x1a2   : > { %p19_p3 = scmp.ge.s32.totalorder %s22_s26, 4   ;;  %s1565_s22 = smov %s1187_s23 }
 0x1a3   : > { %s1566_s23 = smov %s1294_s11  ;;  %s1567_s24 = smov %s1195_s25 }
 0x1a4   : > { %s1568_s25 = smov %s1570_s29  ;;  %21 = sbr.rel (!%p19_p3) target bundleno = 6 (0x6), region = 108 }
 0x1a9   :  { %846 = vsyncpa [#allocation3], 1 }
 0x1aa   :  { %848 = vsyncpa [#allocation3 + $0x1], 1 }
 0x1ab   :  { %849 = vsyncpa [#allocation4], 1 }
 0x1ac   :  { %851 = vsyncpa [#allocation4 + $0x1], 1 }

</bundles_post_ra>
